<compile_context>
chip_gen: v6e
topology: v6e:2x2x1
jax: 0.10.0
libtpu: 0.0.40
codegen_flags: <defaults>
</compile_context>

<pallas_src>
import math

import numpy as np

import jax
import jax.numpy as jnp
from jax.experimental import pallas as pl
from jax.experimental.pallas import tpu as pltpu


# ----------------------------- configuration ------------------------------
IN_DIM = 3
NUM_FREQUENCIES = 6
MIN_FREQ_EXP = 0.0
MAX_FREQ_EXP = 5.0
INCLUDE_INPUT = True


def get_out_dim() -> int:
    enc_dim = IN_DIM * NUM_FREQUENCIES * 2
    return enc_dim + IN_DIM if INCLUDE_INPUT else enc_dim


def _two_pi_freqs_np() -> np.ndarray:
    exps = np.linspace(MIN_FREQ_EXP, MAX_FREQ_EXP, NUM_FREQUENCIES, dtype=np.float32)
    return (np.float32(2.0 * np.pi) * np.exp2(exps)).astype(np.float32)


# ------------------------------- kernel -----------------------------------
def _tcnn_kernel(params_ref, x_ref, o_ref):
    """Channel-major (lane-dense) encoding kernel.

    params_ref: (6,) SMEM f32 -- [bbox_min(3), 1/(bbox_max - bbox_min)(3)]
    x_ref:      (3, tm) VMEM f32 -- points, channel-major (lane axis = points)
    o_ref:      (out_rows, tm) VMEM out_dtype -- encodings (+ zero pad rows)
    """
    F = NUM_FREQUENCIES
    tm = x_ref.shape[1]
    step = (MAX_FREQ_EXP - MIN_FREQ_EXP) / (F - 1) if F > 1 else 0.0

    # f_k = 2^linspace(min, max, F) as an (F, 1) column, built in-kernel
    # (no constant capture, no degenerate VMEM input).
    k = jax.lax.broadcasted_iota(jnp.int32, (F, 1), 0).astype(jnp.float32)
    freqs = jnp.exp2(MIN_FREQ_EXP + k * step)                          # (F, 1)

    xs, sins, coss = [], [], []
    for d in range(IN_DIM):
        lo = params_ref[d]                    # SMEM scalar
        inv = params_ref[IN_DIM + d]          # SMEM scalar
        xd = jnp.clip((x_ref[d:d + 1, :] - lo) * inv, 0.0, 1.0)        # (1, tm)
        t = xd * freqs                                                  # (F, tm)
        # Range reduction: sin/cos(2*pi*f*x) == sin/cos(2*pi*frac(f*x))
        # since floor(f*x) is an integer.  Keeps EUP args in [0, 2*pi).
        frac = t - jnp.floor(t)
        ang = (2.0 * math.pi) * frac
        xs.append(xd)
        sins.append(jnp.sin(ang))
        coss.append(jnp.cos(ang))

    pieces = xs + sins + coss                                          # 3 + 18 + 18 rows
    pad_rows = o_ref.shape[0] - get_out_dim()
    if pad_rows:
        pieces.append(jnp.zeros((pad_rows, tm), jnp.float32))

    # Single aligned full-block store (instead of many sub-8/16-row stores).
    o_ref[...] = jnp.concatenate(pieces, axis=0).astype(o_ref.dtype)


# ------------------------------ wrapper ------------------------------------
def tcnn_forward(in_tensor: jnp.ndarray, bbox: jnp.ndarray, *,
                 tm: int = 32768,
                 out_dtype=jnp.bfloat16,
                 channel_major_output: bool = False) -> jnp.ndarray:
    """in_tensor: (..., 3) float; bbox: (2, 3) float (row 0 = min, row 1 = max).

    channel_major_output=True returns the lane-dense (out_dim, N) block with no
    HBM transpose (for a fused downstream MLP); default returns (..., out_dim).
    """
    assert tm % 128 == 0, "tm must be a multiple of 128 (lane width)"
    sh = in_tensor.shape
    out_dim = get_out_dim()

    x = in_tensor.reshape(-1, IN_DIM).astype(jnp.float32)
    n = x.shape[0]

    # Channel-major (lane-dense) layout: points on the lane axis.
    x_cm = x.T                                            # (3, n)
    n_pad = ((n + 127) // 128) * 128
    if n_pad != n:
        x_cm = jnp.pad(x_cm, ((0, 0), (0, n_pad - n)))    # pad lanes only

    # Tile size: as large as possible, but guarantee grid >= 2 when there is
    # enough work so v7x's second TensorCore is not idle.
    tm_eff = min(tm, n_pad)
    if tm_eff >= n_pad and n_pad >= 256:
        tm_eff = ((n_pad // 2 + 127) // 128) * 128
    grid = pl.cdiv(n_pad, tm_eff)

    bbox = bbox.astype(jnp.float32)
    params = jnp.concatenate([bbox[0], 1.0 / (bbox[1] - bbox[0])])     # (6,) SMEM scalars

    # Pad output channels to a sublane multiple (40 for f32, 48 for bf16).
    sub = 8 if jnp.dtype(out_dtype).itemsize == 4 else 16
    out_rows = ((out_dim + sub - 1) // sub) * sub

    out_cm = pl.pallas_call(
        _tcnn_kernel,
        out_shape=jax.ShapeDtypeStruct((out_rows, n_pad), out_dtype),
        grid_spec=pltpu.PrefetchScalarGridSpec(
            num_scalar_prefetch=0,
            grid=(grid,),
            in_specs=[
                pl.BlockSpec(memory_space=pltpu.MemorySpace.SMEM),       # bbox params
                pl.BlockSpec((IN_DIM, tm_eff), lambda i: (0, i)),        # points tile
            ],
            out_specs=pl.BlockSpec((out_rows, tm_eff), lambda i: (0, i)),
        ),
        compiler_params=pltpu.CompilerParams(
            dimension_semantics=("parallel",),
            vmem_limit_bytes=48 << 20,   # large tiles on v5e too (16 MiB default scoped)
        ),
    )(params, x_cm)

    if channel_major_output:
        # Lane-dense (out_dim, N): no HBM transpose; a downstream MLP's first
        # matmul can consume this operand directly on the MXU.
        return out_cm[:out_dim, :n]

    # Module-compatible row-major output.  The slice + transpose fuse into a
    # single XLA pass (layout plumbing only).
    out = out_cm[:out_dim, :n].T
    return out.reshape(sh[:-1] + (out_dim,))


# --------------------------- pure-JAX reference -----------------------------
def tcnn_reference(in_tensor, bbox):
    sh = in_tensor.shape
    x = in_tensor.reshape(-1, IN_DIM).astype(jnp.float32)
    bbox = bbox.astype(jnp.float32)
    xyz = jnp.clip((x - bbox[:1]) / (bbox[1:] - bbox[:1]), 0.0, 1.0)
    two_pi_freqs = jnp.asarray(_two_pi_freqs_np())                       # (F,)
    scaled = xyz[:, :, None] * two_pi_freqs[None, None, :]               # (N, 3, F)
    scaled = scaled.reshape(x.shape[0], -1)                              # (N, 3F)
    enc = jnp.concatenate([jnp.sin(scaled), jnp.cos(scaled)], axis=-1)   # (N, 6F)
    out = jnp.concatenate([xyz, enc], axis=-1) if INCLUDE_INPUT else enc
    return out.reshape(sh[:-1] + (get_out_dim(),))


# ---------------------------------- main ------------------------------------
if __name__ == "__main__":
    key = jax.random.PRNGKey(0)
    k1, _ = jax.random.split(key)

    # small shapes: batch=2, rays=200, coords=3 -> flattens to (400, 3)
    # (exercises lane padding 400->512 and a 2-step grid)
    in_tensor = jax.random.uniform(k1, (2, 200, 3), dtype=jnp.float32,
                                   minval=-1.5, maxval=1.5)
    bbox = jnp.array([[-1.0, -1.0, -1.0],
                      [1.0, 1.0, 1.0]], dtype=jnp.float32)

    ref = tcnn_reference(in_tensor, bbox)
    out_dim = get_out_dim()

    # Default path: bf16 output (halves HBM writeback), row-major like the module.
    out_bf16 = jax.block_until_ready(tcnn_forward(in_tensor, bbox))
    assert out_bf16.shape == (2, 200, out_dim), out_bf16.shape
    assert out_bf16.dtype == jnp.bfloat16
    assert jnp.allclose(out_bf16.astype(jnp.float32), ref, atol=1e-2, rtol=0.0), \
        "bf16 mismatch vs reference"

    # f32 path: in-kernel range reduction keeps this tight.
    out_f32 = jax.block_until_ready(tcnn_forward(in_tensor, bbox, out_dtype=jnp.float32))
    assert out_f32.shape == (2, 200, out_dim)
    assert jnp.allclose(out_f32, ref, atol=1e-4, rtol=1e-4), "f32 mismatch vs reference"

    # Channel-major path (no wrapper HBM transpose) must agree as well.
    out_cm = jax.block_until_ready(
        tcnn_forward(in_tensor, bbox, out_dtype=jnp.float32, channel_major_output=True))
    assert out_cm.shape == (out_dim, 2 * 200), out_cm.shape
    assert jnp.allclose(out_cm.T.reshape(2, 200, out_dim), ref, atol=1e-4, rtol=1e-4), \
        "channel-major mismatch vs reference"

    print("KERNEL_OK")
</pallas_src>

<mosaic_0001>
module attributes {stable_mosaic.version = 11 : i64} {
  func.func @_tcnn_kernel(%arg0: i32, %arg1: memref<6xf32, #tpu.memory_space<smem>>, %arg2: memref<3x256xf32, #tpu.memory_space<vmem>>, %arg3: memref<48x256xbf16, #tpu.memory_space<vmem>>) attributes {dimension_semantics = [#tpu.dimension_semantics<parallel>], iteration_bounds = array<i64: 2>, scalar_prefetch = 0 : i64, scratch_operands = 0 : i64, tpu.core_type = #tpu.core_type<tc>, window_params = [{transform_indices = @transform_0, window_bounds = array<i64: 6>}, {transform_indices = @transform_1, window_bounds = array<i64: 3, 256>}, {transform_indices = @transform_2, window_bounds = array<i64: 48, 256>}]} {
    %0 = tpu.iota {dimensions = array<i32: 0>} : vector<6x1xi32>
    %1 = arith.sitofp %0 : vector<6x1xi32> to vector<6x1xf32>
    %cst = arith.constant 1.000000e+00 : f32
    %2 = vector.broadcast %cst : f32 to vector<6x1xf32>
    %3 = arith.mulf %1, %2 : vector<6x1xf32>
    %cst_0 = arith.constant 0.000000e+00 : f32
    %4 = vector.broadcast %cst_0 : f32 to vector<6x1xf32>
    %5 = arith.addf %4, %3 : vector<6x1xf32>
    %6 = math.exp2 %5 : vector<6x1xf32>
    %c0 = arith.constant 0 : index
    %7 = memref.load %arg1[%c0] : memref<6xf32, #tpu.memory_space<smem>>
    %c3 = arith.constant 3 : index
    %8 = memref.load %arg1[%c3] : memref<6xf32, #tpu.memory_space<smem>>
    %c0_1 = arith.constant 0 : index
    %c0_2 = arith.constant 0 : index
    %9 = vector.load %arg2[%c0_1, %c0_2] : memref<3x256xf32, #tpu.memory_space<vmem>>, vector<1x256xf32>
    %10 = vector.broadcast %7 : f32 to vector<1x256xf32>
    %11 = arith.subf %9, %10 : vector<1x256xf32>
    %12 = vector.broadcast %8 : f32 to vector<1x256xf32>
    %13 = arith.mulf %11, %12 : vector<1x256xf32>
    %cst_3 = arith.constant 0.000000e+00 : f32
    %cst_4 = arith.constant 1.000000e+00 : f32
    %14 = vector.broadcast %cst_3 : f32 to vector<1x256xf32>
    %15 = arith.maximumf %14, %13 : vector<1x256xf32>
    %16 = vector.broadcast %cst_4 : f32 to vector<1x256xf32>
    %17 = arith.minimumf %16, %15 : vector<1x256xf32>
    %18 = vector.broadcast %17 : vector<1x256xf32> to vector<6x256xf32>
    %19 = vector.broadcast %6 : vector<6x1xf32> to vector<6x256xf32>
    %20 = arith.mulf %18, %19 : vector<6x256xf32>
    %21 = math.floor %20 : vector<6x256xf32>
    %22 = arith.subf %20, %21 : vector<6x256xf32>
    %cst_5 = arith.constant 6.28318548 : f32
    %23 = vector.broadcast %cst_5 : f32 to vector<6x256xf32>
    %24 = arith.mulf %23, %22 : vector<6x256xf32>
    %25 = math.sin %24 : vector<6x256xf32>
    %26 = math.cos %24 : vector<6x256xf32>
    %c1 = arith.constant 1 : index
    %27 = memref.load %arg1[%c1] : memref<6xf32, #tpu.memory_space<smem>>
    %c4 = arith.constant 4 : index
    %28 = memref.load %arg1[%c4] : memref<6xf32, #tpu.memory_space<smem>>
    %c1_6 = arith.constant 1 : index
    %c0_7 = arith.constant 0 : index
    %29 = vector.load %arg2[%c1_6, %c0_7] : memref<3x256xf32, #tpu.memory_space<vmem>>, vector<1x256xf32>
    %30 = vector.broadcast %27 : f32 to vector<1x256xf32>
    %31 = arith.subf %29, %30 : vector<1x256xf32>
    %32 = vector.broadcast %28 : f32 to vector<1x256xf32>
    %33 = arith.mulf %31, %32 : vector<1x256xf32>
    %cst_8 = arith.constant 0.000000e+00 : f32
    %cst_9 = arith.constant 1.000000e+00 : f32
    %34 = vector.broadcast %cst_8 : f32 to vector<1x256xf32>
    %35 = arith.maximumf %34, %33 : vector<1x256xf32>
    %36 = vector.broadcast %cst_9 : f32 to vector<1x256xf32>
    %37 = arith.minimumf %36, %35 : vector<1x256xf32>
    %38 = vector.broadcast %37 : vector<1x256xf32> to vector<6x256xf32>
    %39 = vector.broadcast %6 : vector<6x1xf32> to vector<6x256xf32>
    %40 = arith.mulf %38, %39 : vector<6x256xf32>
    %41 = math.floor %40 : vector<6x256xf32>
    %42 = arith.subf %40, %41 : vector<6x256xf32>
    %cst_10 = arith.constant 6.28318548 : f32
    %43 = vector.broadcast %cst_10 : f32 to vector<6x256xf32>
    %44 = arith.mulf %43, %42 : vector<6x256xf32>
    %45 = math.sin %44 : vector<6x256xf32>
    %46 = math.cos %44 : vector<6x256xf32>
    %c2 = arith.constant 2 : index
    %47 = memref.load %arg1[%c2] : memref<6xf32, #tpu.memory_space<smem>>
    %c5 = arith.constant 5 : index
    %48 = memref.load %arg1[%c5] : memref<6xf32, #tpu.memory_space<smem>>
    %c2_11 = arith.constant 2 : index
    %c0_12 = arith.constant 0 : index
    %49 = vector.load %arg2[%c2_11, %c0_12] : memref<3x256xf32, #tpu.memory_space<vmem>>, vector<1x256xf32>
    %50 = vector.broadcast %47 : f32 to vector<1x256xf32>
    %51 = arith.subf %49, %50 : vector<1x256xf32>
    %52 = vector.broadcast %48 : f32 to vector<1x256xf32>
    %53 = arith.mulf %51, %52 : vector<1x256xf32>
    %cst_13 = arith.constant 0.000000e+00 : f32
    %cst_14 = arith.constant 1.000000e+00 : f32
    %54 = vector.broadcast %cst_13 : f32 to vector<1x256xf32>
    %55 = arith.maximumf %54, %53 : vector<1x256xf32>
    %56 = vector.broadcast %cst_14 : f32 to vector<1x256xf32>
    %57 = arith.minimumf %56, %55 : vector<1x256xf32>
    %58 = vector.broadcast %57 : vector<1x256xf32> to vector<6x256xf32>
    %59 = vector.broadcast %6 : vector<6x1xf32> to vector<6x256xf32>
    %60 = arith.mulf %58, %59 : vector<6x256xf32>
    %61 = math.floor %60 : vector<6x256xf32>
    %62 = arith.subf %60, %61 : vector<6x256xf32>
    %cst_15 = arith.constant 6.28318548 : f32
    %63 = vector.broadcast %cst_15 : f32 to vector<6x256xf32>
    %64 = arith.mulf %63, %62 : vector<6x256xf32>
    %65 = math.sin %64 : vector<6x256xf32>
    %66 = math.cos %64 : vector<6x256xf32>
    %cst_16 = arith.constant 0.000000e+00 : f32
    %67 = vector.broadcast %cst_16 : f32 to vector<9x256xf32>
    %68 = tpu.concatenate %17, %37, %57, %25, %45, %65, %26, %46, %66, %67 in 0 : vector<1x256xf32>, vector<1x256xf32>, vector<1x256xf32>, vector<6x256xf32>, vector<6x256xf32>, vector<6x256xf32>, vector<6x256xf32>, vector<6x256xf32>, vector<6x256xf32>, vector<9x256xf32> -> vector<48x256xf32>
    %69 = arith.truncf %68 : vector<48x256xf32> to vector<48x256xbf16>
    %c0_17 = arith.constant 0 : index
    %c0_18 = arith.constant 0 : index
    %70 = vector.load %arg3[%c0_17, %c0_18] : memref<48x256xbf16, #tpu.memory_space<vmem>>, vector<48x256xbf16>
    tpu.vector_store %arg3[%c0_17, %c0_18], %69 {strides = array<i32>} : memref<48x256xbf16, #tpu.memory_space<vmem>>, vector<48x256xbf16>,
    return
  }
  func.func @transform_0(%arg0: i32) -> i32 {
    %c0_i32 = arith.constant 0 : i32
    %c0_i32_0 = arith.constant 0 : i32
    return %c0_i32 : i32
  }
  func.func @transform_1(%arg0: i32) -> (i32, i32) {
    %c0_i32 = arith.constant 0 : i32
    %c0_i32_0 = arith.constant 0 : i32
    return %c0_i32, %arg0 : i32, i32
  }
  func.func @transform_2(%arg0: i32) -> (i32, i32) {
    %c0_i32 = arith.constant 0 : i32
    %c0_i32_0 = arith.constant 0 : i32
    return %c0_i32, %arg0 : i32, i32
  }
}

</mosaic_0001>

<bundles_post_ra>
// kernel: tpu_custom_call.1
= control target key start
LH: loop header
LB: loop body
LE: loop exit
PB: predicated region body
PF: predicated region fallthrough
CT: control target
= control target key end

     0   :  { %7 = vsyncpa [#allocation5], 0  ;;  %s2933_s0 = inlined_call_operand.hbm [shape: f32[6], index: 0, kind: input, shape index: {}]   ;;  %s2934_s1 = inlined_call_operand.hbm [shape: f32[3,512], index: 1, kind: input, shape index: {}]   ;;  %s2935_s2 = inlined_call_operand.hbm [shape: bf16[48,512], index: 2, kind: output, shape index: {}]  }
   0x1   :  { %8 = vsyncpa [#allocation3], 0 }
   0x2   :  { %10 = vsyncpa [#allocation3 + $0x1], 0 }
   0x3   :  { %11 = vsyncpa [#allocation4], 0 }
   0x4   :  { %13 = vsyncpa [#allocation4 + $0x1], 0  ;;  %s2045_s9 = smov 0   ;;  %s2047_s10 = smov 0  }
   0x5   :  { %s2049_s11 = smov 0   ;;  %s2051_s12 = smov 0  }
   0x6 LB: > { %s2066_s13 = sadd.s32 4294967295, %s2015_s12   ;;  %s1707_s14 = sadd.s32 4294967294, %s2015_s12   ;;  %s2015_s12 = sphi %s2051_s12, %s2967_s12   ;;  %s2011_s11 = sphi %s2049_s11, %s2966_s11   ;;  %s2007_s10 = sphi %s2047_s10, %s2965_s10   ;;  %s2003_s9 = sphi %s2045_s9, %s2964_s9  }
   0x7   : > { %p60_p0 = scmp.ne.s32.totalorder %s2007_s10, %s2003_s9  ;;  %p2936_p1 = scmp.eq.s32.totalorder %s2066_s13, 0 }
   0x8   : > { %p84_p2 = scmp.eq.s32.totalorder %s2066_s13, 1  ;;  %p90_p3 = scmp.eq.s32.totalorder %s1707_s14, 1 }
   0x9   : > { %p2075_p4 = por %p2936_p1, %p60_p0  ;;  %p1708_p5 = scmp.ge.s32.totalorder %s2015_s12, 1 }
   0xa   : > { %p2080_p6 = por %p90_p3, %p60_p0  ;;  %p97_p7 = scmp.lt.s32.totalorder %s2015_s12, 3 }
   0xb   : > { %s2940_s15 = scalar_select %p2075_p4, 1, 0 }
   0xc   : > { %s2941_s16 = scalar_select %p2080_p6, 1, 0 }
   0xd   : > { %p2085_p8 = pnand %p1708_p5, %p97_p7  ;;  %s2091_s18 = sadd.s32 1, %s2015_s12  }
   0xe   : > { %s44_s19 = ssub.s32 %s2015_s12, %s2091_s18  ;;  %s47_s20 = sadd.s32 1, %s2011_s11 }
   0xf   : > { %s2942_s17 = scalar_select %p2085_p8, 1, 0 }
  0x10   : > { %p1823_p10 = pneg %p2085_p8  ;;  %p45_p12 = scmp.eq.s32.totalorder %s44_s19, 0 }
  0x11   : > { %p54_p13 = scmp.ne.s32.totalorder %s2011_s11, %s2007_s10  ;;  %p55_p0 = scmp.eq.s32.totalorder %s2015_s12, 0 }
  0x12   : > { %p1824_p11 = pnand %p1823_p10, %p2936_p1  ;;  %p1836_p3 = scmp.lt.s32.totalorder %s2015_s12, 2 }
  0x13   : > { %s2017_s21 = smov [#allocation2]   ;;  %p56_p5 = por %p55_p0, %p54_p13 }
  0x14   : > { %1826 = dma.hbm_to_smem (!%p1824_p11), %s2933_s0, 16, %s2017_s21, [#allocation5]  }
  0x15   : > { %s2108_s24 = scalar_select %p45_p12, %s2011_s11, %s47_s20  }
  0x16   : > { %p2112_p7 = por %p84_p2, %p54_p13  ;;  %s119_s26 = sand.u32 1, %s2011_s11  }
  0x17   : > { %s1782_s27 = sshll.u32 %s2015_s12, 7  ;;  %s1711_s28 = sshll.u32 %s119_s26, 3 }
  0x18   : > { %s2943_s25 = scalar_select %p2112_p7, 1, 0 }
  0x19   : > { %s2121_s3 = scalar_lea.hbm %s2934_s1, %s1782_s27  ;;  %s123_s4 = scalar_lea.vmem [#allocation6], %s1711_s28 }
  0x1a   : > { %s131_s5 = sshll.u32 %s123_s4, 4  ;;  %p2123_p10 = pnand %p1836_p3, %p56_p5  ;;  %s132_s5 = int_to_ptr.vmem [resolvable:$true] %s131_s5 }
  0x1b   : > { %s120_s7 = scalar_lea.sflag [#allocation3], %s119_s26  ;;  %s1919_s8 = scalar_lea.hbm %s2121_s3, 128 }
  0x1c   : > { %p1920_p2 = scmp.ne.s32.totalorder %s2121_s3, %s1919_s8  ;;  %p1921_p11 = pneg %p2123_p10 }
  0x1d   : > { %s1924_s20 = scalar_lea.hbm %s2934_s1, 256  ;;  %p1925_p0 = scmp.lt.s32.totalorder %s2121_s3, %s2934_s1 }
  0x1e   : > { %p1922_p12 = pnand %p1921_p11, %p1920_p2  ;;  %p1926_p3 = scmp.lt.s32.totalorder %s1924_s20, %s1919_s8 }
  0x20   : > { %p1923_p13 = pneg %p1922_p12  ;;  %p1927_p5 = por %p1926_p3, %p1925_p0 }
  0x22   : > { %p1928_p9 = pnand %p1927_p5, %p1923_p13 }
  0x24   : > { %1931 = shalt.err (!%p1928_p9)
}
  0x25   : > { %s1932_s23 = scalar_lea.vmem %s132_s5, 128  ;;  %s2018_s26 = smov [#allocation6]  }
  0x26   : > { %p1933_p1 = scmp.ne.s32.totalorder %s132_s5, %s1932_s23  ;;  %s1937_s27 = sshll.u32 %s2018_s26, 4  ;;  %s1938_s27 = int_to_ptr.vmem [resolvable:$false] %s1937_s27 }
  0x27   : > { %s1939_s28 = scalar_lea.vmem %s1938_s27, 256  ;;  %p1940_p2 = scmp.lt.s32.totalorder %s132_s5, %s1938_s27 }
  0x28   : > { %p1935_p6 = pnand %p1933_p1, %p1921_p11  ;;  %p1941_p12 = scmp.lt.s32.totalorder %s1939_s28, %s1932_s23 }
  0x2a   : > { %p1936_p7 = pneg %p1935_p6  ;;  %p1942_p4 = por %p1941_p12, %p1940_p2 }
  0x2c   : > { %p1943_p8 = pnand %p1942_p4, %p1936_p7 }
  0x2e   : > { %1946 = shalt.err (!%p1943_p8)
}
  0x2f   : > { %1830 = dma.hbm_to_vmem [thread:$0]  (!%p2123_p10), %s2121_s3, 128, %s132_s5, %s120_s7  }
  0x30   : > { %p2945_p13 = scmp.ne.s32.totalorder %s2942_s17, 0 }
  0x31   : > { %p2946_p9 = scmp.eq.s32.totalorder (!%p2945_p13), %s2066_s13, 0 }
  0x32   : > { %140 = sbr.rel (%p2945_p13) target bundleno = 306 (0x132), region = 28 }
  0x37   : > { %1990 = dma.done.wait (%p2946_p9), [#allocation5], 16   ;;  %p2947_p1 = pmov %p2946_p9 }
  0x38   : > { %s2148_s29 = sand.u32 1, %s2007_s10   ;;  %p2948_p4 = scmp.ne.s32.totalorder %s2940_s15, 0 }
  0x39   : > { %1992 = vsyncadd (%p2947_p1), [#allocation5], 4294967280  ;;  %s1716_s30 = sshll.u32 %s2148_s29, 3  ;;  %s147_s4 = scalar_lea.sflag [#allocation3], %s2148_s29 }
  0x3a   : > { %s2152_s6 = scalar_lea.vmem [#allocation6], %s1716_s30 }
  0x3b   : > { %1994 = dma.done.wait (%p2948_p4), %s147_s4, 128  }
  0x3c   : > { %1996 = vsyncadd (%p2948_p4), %s147_s4, 4294967168 }
  0x3d   : > { %155 = sfence }
  0x3e   : > { %v174_v0 = vlaneseq  ;;  %s179_s17 = sld [smem:[#allocation2]]  ;;  %v181_v3 = vld [vmem:[%s2152_s6] ss:$4 sm:$0x3]  ;;  %s1790_s14 = smul.u32 48, %s2148_s29 }
  0x3f   : > { %s1717_s3 = sld [smem:[#allocation2 + $0x3]]  ;;  %v1736_v7 = vld [vmem:[%s2152_s6 + $0x1] ss:$4 sm:$0x3]  ;;  %s1789_s20 = sshll.u32 %s2066_s13, 7 }
  0x40   : > { %v175_v1 = vshrl.u32 %v174_v0, 7  ;;  %s1734_s5 = sld [smem:[#allocation2 + $0x1]]  ;;  %v1755_v51 = vld [vmem:[%s2152_s6 + $0x2] ss:$4 sm:$0x3]  ;;  %s2797_s19 = scalar_lea.vmem [#allocation7], %s1790_s14 }
  0x41   : > { %s1735_s7 = sld [smem:[#allocation2 + $0x4]]  ;;  %s1622_s21 = sshll.u32 %s2797_s19, 4  ;;  %s2887_s21 = int_to_ptr.vmem [resolvable:$true] %s1622_s21 }
  0x42   : > { %v176_v2 = vcvt.s32.f32 %v175_v1  ;;  %v2160_v13 = vsub.s32 0, %v175_v1  ;;  %v2162_v14 = vsub.s32 1, %v175_v1  ;;  %s1753_s15 = sld [smem:[#allocation2 + $0x2]]  ;;  %s2884_s23 = scalar_lea.hbm %s2935_s2, %s1789_s20 }
  0x43   : > { %s2194_s8 = sld [smem:[#allocation2 + $0x5]]  ;;  %s1609_s26 = scalar_lea.sflag [#allocation4], %s2148_s29 }
  0x44   : > { %1882 = vpow2.f32 %v176_v2  ;;  %v182_v4 = vstv %s179_s17  ;;  %s1947_s27 = scalar_lea.vmem %s2887_s21, 768  ;;  %p2961_p8 = scmp.ne.s32.totalorder %s2943_s25, 0 }
  0x45   : > { %v183_v5 = vsub.f32 %v181_v3, %v182_v4  ;;  %v184_v6 = vstv %s1717_s3  ;;  %p1948_p6 = scmp.ne.s32.totalorder %s2887_s21, %s1947_s27  ;;  %s2026_s28 = smov [#allocation7]  }
  0x46   : > { %v625_v9 = vstv %s1734_s5  ;;  %s1951_s30 = sshll.u32 %s2026_s28, 4  ;;  %s1952_s30 = int_to_ptr.vmem [resolvable:$false] %s1951_s30 }
  0x47   : > { %v185_v8 = vmul.f32 %v184_v6, %v183_v5  ;;  %v626_v10 = vsub.f32 %v1736_v7, %v625_v9  ;;  %v627_v11 = vstv %s1735_s7  ;;  %v2019_v5 = vmov 683565275   ;;  %p1949_p7 = pnand %p1948_p6, %p2961_p8  ;;  %s1953_s4 = scalar_lea.vmem %s1952_s30, 1536 }
  0x48   : > { %v1068_v52 = vstv %s1753_s15  ;;  %v2020_v7 = vmov 2475754826   ;;  %v2021_v9 = vmov 2131351028   ;;  %p1954_p11 = scmp.lt.s32.totalorder %s2887_s21, %s1952_s30  ;;  %p1955_p0 = scmp.lt.s32.totalorder %s1953_s4, %s1947_s27 }
  0x49   : > { %v186_v12 = vmax.f32 %v185_v8, 0.0  ;;  %v628_v15 = vmul.f32 %v627_v11, %v626_v10  ;;  %v2204_v58 = vsub.f32 %v1755_v51, %v1068_v52  ;;  %v1070_v59 = vstv %s2194_s8  ;;  %p1950_p10 = pneg %p1949_p7 }
  0x4a   : > { %v2022_v11 = vmov 2102212464   ;;  %p1956_p3 = por %p1955_p0, %p1954_p11 }
  0x4b   : > { %v187_v16 = vmin.f32 %v186_v12, 1.0  ;;  %v629_v17 = vmax.f32 %v628_v15, 0.0  ;;  %v2023_v15 = vmov 920167782  }
  0x4c   : > { %p1957_p5 = pnand %p1956_p3, %p1950_p10 }
  0x4d   : > { %v2165_v18 = vrot.slane %v187_v16, %v2160_v13  ;;  %v2168_v19 = vrot.slane %v187_v16, %v2162_v14  ;;  %v630_v20 = vmin.f32 %v629_v17, 1.0 }
  0x4f   : > { %v2171_v21 = vrot.slane %v630_v20, %v2160_v13  ;;  %v2186_v34 = vrot.slane %v630_v20, %v2162_v14 }
  0x51   : > { %v2173_v22 = vpop.eup %1882 }
  0x52   : > { %v199_v23 = vmul.f32 %v2173_v22, %v2165_v18  ;;  %v200_v24 = vmul.f32 %v2173_v22, %v2168_v19  ;;  %v642_v25 = vmul.f32 %v2173_v22, %v2171_v21  ;;  %v643_v41 = vmul.f32 %v2173_v22, %v2186_v34 }
  0x54   : > { %v201_v26 = vfloor.f32 %v199_v23  ;;  %v202_v27 = vfloor.f32 %v200_v24  ;;  %v644_v28 = vfloor.f32 %v642_v25  ;;  %v645_v50 = vfloor.f32 %v643_v41 }
  0x56   : > { %v203_v29 = vsub.f32 %v199_v23, %v201_v26  ;;  %v204_v30 = vsub.f32 %v200_v24, %v202_v27  ;;  %v646_v31 = vsub.f32 %v642_v25, %v644_v28  ;;  %v2207_v63 = vsub.f32 %v643_v41, %v645_v50 }
  0x57   : > { %v2024_v27 = vmov 1326507024  }
  0x58   : > { %v2181_v32 = vmul.f32 6.2831855, %v203_v29  ;;  %v2183_v33 = vmul.f32 6.2831855, %v204_v30  ;;  %v2188_v35 = vmul.f32 6.2831855, %v646_v31 }
  0x5a   : > { %v207_v36 = vand.u32 2147483647, %v2181_v32  ;;  %v210_v37 = vand.u32 2139095040, %v2181_v32  ;;  %v311_v38 = vand.u32 2147483647, %v2183_v33  ;;  %v314_v39 = vand.u32 2139095040, %v2183_v33 }
  0x5b   : > { %v653_v45 = vand.u32 2139095040, %v2188_v35 }
  0x5c   : > { %v211_v40 = vshrl.u32 %v210_v37, 23  ;;  %v214_v42 = vand.u32 8388607, %v207_v36  ;;  %v315_v43 = vshrl.u32 %v314_v39, 23  ;;  %v318_v44 = vand.u32 8388607, %v311_v38 }
  0x5d   : > { %v654_v48 = vshrl.u32 %v653_v45, 23 }
  0x5e   : > { %v1718_v46 = vadd.s32 4294967169, %v211_v40  ;;  %v1722_v47 = vadd.s32 4294967169, %v315_v43  ;;  %v215_v53 = vor.u32 8388608, %v214_v42  ;;  %v319_v54 = vor.u32 8388608, %v318_v44 }
  0x5f   : > { %v1737_v56 = vadd.s32 4294967169, %v654_v48 }
  0x60   : > { %v217_v49 = vadd.s32 1, %v1718_v46  ;;  %v321_v55 = vadd.s32 1, %v1722_v47  ;;  %v2209_v0 = vshll.u32 %v215_v53, 8  ;;  %v2211_v2 = vshll.u32 %v319_v54, 8 }
  0x61   : > { %v2213_v3 = vadd.s32 1, %v1737_v56 }
  0x62   : > { %vm218_vm0 = vcmp.gt.s32.totalorder %v217_v49, 0  ;;  %vm322_vm1 = vcmp.gt.s32.totalorder %v321_v55, 0 }
  0x63   : > { %v219_v57 = vsel %vm218_vm0, %v217_v49, 0  ;;  %v323_v62 = vsel %vm322_vm1, %v321_v55, 0  ;;  %vm661_vm6 = vcmp.gt.s32.totalorder %v2213_v3, 0 }
  0x64   : > { %v220_v60 = vshrl.u32 %v219_v57, 5  ;;  %v221_v61 = vand.u32 31, %v219_v57  ;;  %v325_v1 = vand.u32 31, %v323_v62  ;;  %v2220_v17 = vshrl.u32 %v323_v62, 5 }
  0x66   : > { %v222_v4 = vsub.s32 32, %v221_v61  ;;  %v224_v6 = vshll.u32 %v2019_v5, %v221_v61  ;;  %v227_v8 = vshll.u32 %v2020_v7, %v221_v61  ;;  %v230_v10 = vshll.u32 %v2021_v9, %v221_v61 }
  0x67   : > { %v233_v12 = vshll.u32 %v2022_v11, %v221_v61  ;;  %v236_v16 = vshll.u32 %v2023_v15, %v221_v61  ;;  %vm239_vm2 = vcmp.lt.s32.totalorder %v220_v60, 1  ;;  %vm240_vm3 = vcmp.lt.s32.totalorder %v220_v60, 2 }
  0x68   : > { %v223_v20 = vshrl.u32 %v2019_v5, %v222_v4  ;;  %v225_v23 = vshrl.u32 %v2020_v7, %v222_v4  ;;  %v228_v24 = vshrl.u32 %v2021_v9, %v222_v4  ;;  %v231_v25 = vshrl.u32 %v2022_v11, %v222_v4 }
  0x69   : > { %v234_v26 = vshrl.u32 %v2023_v15, %v222_v4  ;;  %v237_v28 = vshrl.u32 %v2024_v27, %v222_v4  ;;  %vm242_vm4 = vcmp.lt.s32.totalorder %v220_v60, 4  ;;  %v326_v37 = vsub.s32 32, %v325_v1 }
  0x6a   : > { %v226_v29 = vor.u32 %v225_v23, %v224_v6  ;;  %v229_v30 = vor.u32 %v228_v24, %v227_v8  ;;  %v232_v31 = vor.u32 %v231_v25, %v230_v10  ;;  %vm241_vm5 = vcmp.lt.s32.totalorder %v220_v60, 3 }
  0x6b   : > { %v235_v39 = vor.u32 %v234_v26, %v233_v12  ;;  %v238_v40 = vor.u32 %v237_v28, %v236_v16  ;;  %v328_v41 = vshll.u32 %v2019_v5, %v325_v1  ;;  %v331_v49 = vshll.u32 %v2020_v7, %v325_v1 }
  0x6c   : > { %v243_v42 = vsel %vm239_vm2, %v223_v20, %v226_v29  ;;  %v244_v43 = vsel %vm242_vm4, %v232_v31, 2102212464  ;;  %v247_v44 = vsel %vm239_vm2, %v226_v29, %v229_v30  ;;  %v251_v45 = vsel %vm239_vm2, %v229_v30, %v232_v31 }
  0x6d   : > { %v245_v46 = vsel %vm241_vm5, %v229_v30, %v244_v43  ;;  %v248_v47 = vsel %vm242_vm4, %v235_v39, 920167782  ;;  %v252_v48 = vsel %vm242_vm4, %v238_v40, 1326507024  ;;  %v327_v52 = vshrl.u32 %v2019_v5, %v326_v37 }
  0x6e   : > { %v249_v50 = vsel %vm241_vm5, %v232_v31, %v248_v47  ;;  %v253_v51 = vsel %vm241_vm5, %v235_v39, %v252_v48  ;;  %v329_v53 = vshrl.u32 %v2020_v7, %v326_v37  ;;  %v246_v54 = vsel %vm240_vm3, %v243_v42, %v245_v46 }
  0x6f   : > { %v250_v55 = vsel %vm240_vm3, %v247_v44, %v249_v50  ;;  %v254_v56 = vsel %vm240_vm3, %v251_v45, %v253_v51  ;;  %v332_v57 = vshrl.u32 %v2021_v9, %v326_v37  ;;  %v334_v12 = vshll.u32 %v2021_v9, %v325_v1 }
  0x70   : > { %v2241_v61 = vmul.u32.u64.low %v2209_v0, %v254_v56  ;;  %v2242_v62 = vmul.u32.u64.high %v2209_v0, %v254_v56, %v2241_v61  ;;  %v2245_v4 = vmul.u32.u64.low %v2209_v0, %v250_v55  ;;  %v2246_v6 = vmul.u32.u64.high %v2209_v0, %v250_v55, %v2245_v4 }
  0x71   : > { %v330_v8 = vor.u32 %v329_v53, %v328_v41  ;;  %v333_v10 = vor.u32 %v332_v57, %v331_v49  ;;  %v335_v16 = vshrl.u32 %v2022_v11, %v326_v37  ;;  %v337_v60 = vshll.u32 %v2022_v11, %v325_v1 }
  0x72   : > { %v338_v20 = vshrl.u32 %v2023_v15, %v326_v37  ;;  %v340_v23 = vshll.u32 %v2023_v15, %v325_v1  ;;  %v341_v24 = vshrl.u32 %v2024_v27, %v326_v37  ;;  %v262_v25 = vmul.u32 %v2209_v0, %v246_v54 }
  0x73   : > { %v336_v26 = vor.u32 %v335_v16, %v334_v12  ;;  %vm343_vm7 = vcmp.lt.s32.totalorder %v2220_v17, 1  ;;  %vm344_vm8 = vcmp.lt.s32.totalorder %v2220_v17, 2  ;;  %vm264_vm9 = vc.u32 %v2242_v62, %v2245_v4 }
  0x74   : > { %v265_v28 = vadd.s32 1, %v2246_v6  ;;  %v339_v29 = vor.u32 %v338_v20, %v337_v60  ;;  %vm345_vm10 = vcmp.lt.s32.totalorder %v2220_v17, 3  ;;  %v342_v30 = vor.u32 %v341_v24, %v340_v23 }
  0x75   : > { %vm346_vm11 = vcmp.lt.s32.totalorder %v2220_v17, 4  ;;  %v347_v1 = vsel %vm343_vm7, %v327_v52, %v330_v8  ;;  %v351_v31 = vsel %vm343_vm7, %v330_v8, %v333_v10  ;;  %v355_v40 = vsel %vm343_vm7, %v333_v10, %v336_v26 }
  0x76   : > { %v266_v0 = vsel %vm264_vm9, %v265_v28, %v2246_v6  ;;  %v348_v37 = vsel %vm346_vm11, %v336_v26, 2102212464  ;;  %v352_v39 = vsel %vm346_vm11, %v339_v29, 920167782  ;;  %v356_v44 = vsel %vm346_vm11, %v342_v30, 1326507024 }
  0x77   : > { %v267_v41 = vadd.s32 %v266_v0, %v262_v25  ;;  %v349_v42 = vsel %vm345_vm10, %v333_v10, %v348_v37  ;;  %v353_v43 = vsel %vm345_vm10, %v336_v26, %v352_v39  ;;  %v357_v47 = vsel %vm345_vm10, %v339_v29, %v356_v44 }
  0x78   : > { %v350_v45 = vsel %vm344_vm8, %v347_v1, %v349_v42  ;;  %v354_v46 = vsel %vm344_vm8, %v351_v31, %v353_v43  ;;  %v662_v48 = vsel %vm661_vm6, %v2213_v3, 0  ;;  %v358_v50 = vsel %vm344_vm8, %v355_v40, %v357_v47 }
  0x79   : > { %v268_v49 = vadd.s32 536870912, %v267_v41  ;;  %v2274_v51 = vmul.u32.u64.low %v2211_v2, %v354_v46  ;;  %v2275_v52 = vmul.u32.u64.high %v2211_v2, %v354_v46, %v2274_v51  ;;  %v2283_v55 = vmul.f32 6.2831855, %v2207_v63 }
  0x7a   : > { %v2279_v53 = vmul.u32.u64.low %v2211_v2, %v358_v50  ;;  %v2280_v54 = vmul.u32.u64.high %v2211_v2, %v358_v50, %v2279_v53  ;;  %v1071_v56 = vmul.f32 %v1070_v59, %v2204_v58  ;;  %v664_v57 = vand.u32 31, %v662_v48 }
  0x7b   : > { %v2288_v3 = vshrl.u32 %v268_v49, 30  ;;  %v366_v17 = vmul.u32 %v2211_v2, %v350_v45  ;;  %v650_v61 = vand.u32 2147483647, %v2188_v35  ;;  %v369_v8 = vadd.s32 1, %v2275_v52 }
  0x7c   : > { %vm368_vm12 = vc.u32 %v2280_v54, %v2274_v51  ;;  %v757_v63 = vand.u32 2139095040, %v2283_v55  ;;  %v1072_v10 = vmax.f32 %v1071_v56, 0.0  ;;  %v665_v59 = vsub.s32 32, %v664_v57 }
  0x7d   : > { %v270_v6 = vshll.u32 %v2288_v3, 30  ;;  %v370_v58 = vsel %vm368_vm12, %v369_v8, %v2275_v52  ;;  %v657_v2 = vand.u32 8388607, %v650_v61  ;;  %v663_v26 = vshrl.u32 %v662_v48, 5 }
  0x7e   : > { %v371_v16 = vadd.s32 %v370_v58, %v366_v17  ;;  %v758_v23 = vshrl.u32 %v757_v63, 23  ;;  %v2303_v24 = vmin.f32 %v1072_v10, 1.0  ;;  %v673_v28 = vshll.u32 %v2021_v9, %v664_v57 }
  0x7f   : > { %v2297_v12 = vsub.s32 %v267_v41, %v270_v6  ;;  %v674_v29 = vshrl.u32 %v2022_v11, %v665_v59  ;;  %v658_v1 = vor.u32 8388608, %v657_v2  ;;  %v667_v31 = vshll.u32 %v2019_v5, %v664_v57 }
  0x80   : > { %v372_v20 = vadd.s32 536870912, %v371_v16  ;;  %v668_v0 = vshrl.u32 %v2020_v7, %v665_v59  ;;  %v670_v39 = vshll.u32 %v2020_v7, %v664_v57  ;;  %v671_v40 = vshrl.u32 %v2021_v9, %v665_v59 }
  0x81   : > { %v273_v60 = vsub.s32 0, %v2297_v12  ;;  %v676_v41 = vshll.u32 %v2022_v11, %v664_v57  ;;  %v263_v42 = vadd.s32 %v2245_v4, %v2242_v62  ;;  %v677_v44 = vshrl.u32 %v2023_v15, %v665_v59 }
  0x82   : > { %v2308_v30 = vshrl.u32 %v372_v20, 30  ;;  %v1741_v45 = vadd.s32 4294967169, %v758_v23  ;;  %v666_v47 = vshrl.u32 %v2019_v5, %v665_v59  ;;  %v675_v48 = vor.u32 %v674_v29, %v673_v28 }
  0x83   : > { %v1719_v25 = vmin.u32 %v273_v60, %v2297_v12  ;;  %vm685_vm13 = vcmp.lt.s32.totalorder %v663_v26, 4  ;;  %v669_v50 = vor.u32 %v668_v0, %v667_v31  ;;  %v679_v52 = vshll.u32 %v2023_v15, %v664_v57 }
  0x84   : > { %v374_v43 = vshll.u32 %v2308_v30, 30  ;;  %v680_v53 = vshrl.u32 %v2024_v27, %v665_v59  ;;  %v672_v56 = vor.u32 %v671_v40, %v670_v39  ;;  %v678_v17 = vor.u32 %v677_v44, %v676_v41 }
  0x85   : > { %v275_v37 = vclz %v1719_v25  ;;  %v687_v62 = vsel %vm685_vm13, %v675_v48, 2102212464  ;;  %vm682_vm15 = vcmp.lt.s32.totalorder %v663_v26, 1  ;;  %vm683_vm0 = vcmp.lt.s32.totalorder %v663_v26, 2 }
  0x86   : > { %v375_v49 = vsub.s32 %v371_v16, %v374_v43  ;;  %vm684_vm1 = vcmp.lt.s32.totalorder %v663_v26, 3  ;;  %v686_v10 = vsel %vm682_vm15, %v666_v47, %v669_v50  ;;  %v681_v57 = vor.u32 %v680_v53, %v679_v52 }
  0x87   : > { %v1720_v46 = vadd.s32 4294967294, %v275_v37  ;;  %v688_v59 = vsel %vm684_vm1, %v672_v56, %v687_v62  ;;  %v690_v20 = vsel %vm682_vm15, %v669_v50, %v672_v56  ;;  %v691_v23 = vsel %vm685_vm13, %v678_v17, 920167782 }
  0x88   : > { %v377_v6 = vsub.s32 0, %v375_v49  ;;  %v698_v28 = vshll.u32 %v658_v1, 8  ;;  %v2330_v29 = vrot.slane %v2303_v24, %v2160_v13  ;;  %v692_v0 = vsel %vm684_vm1, %v675_v48, %v691_v23 }
  0x89   : > { %vm1721_vm14 = vcmp.lt.s32.totalorder %v1720_v46, 0  ;;  %v694_v37 = vsel %vm682_vm15, %v672_v56, %v675_v48  ;;  %v689_v40 = vsel %vm683_vm0, %v686_v10, %v688_v59  ;;  %v693_v41 = vsel %vm683_vm0, %v690_v20, %v692_v0 }
  0x8a   : > { %v278_v4 = vsel %vm1721_vm14, 0, %v1720_v46  ;;  %v1723_v16 = vmin.u32 %v377_v6, %v375_v49  ;;  %v764_v44 = vadd.s32 1, %v1741_v45  ;;  %v2350_v45 = vmul.f32 %v2173_v22, %v2330_v29 }
  0x8b   : > { %v279_v8 = vsub.s32 32, %v278_v4  ;;  %v283_v63 = vsub.s32 4294967266, %v278_v4  ;;  %v280_v58 = vshll.u32 %v2297_v12, %v278_v4  ;;  %v367_v12 = vadd.s32 %v2274_v51, %v2280_v54 }
  0x8c   : > { %v379_v25 = vclz %v1723_v16  ;;  %v2341_v51 = vmul.u32.u64.low %v698_v28, %v693_v41  ;;  %v2342_v54 = vmul.u32.u64.high %v698_v28, %v693_v41, %v2341_v51  ;;  %vm765_vm3 = vcmp.gt.s32.totalorder %v764_v44, 0 }
  0x8d   : > { %v281_v2 = vshrl.u32 %v263_v42, %v279_v8  ;;  %v284_v60 = vadd.s32 127, %v283_v63  ;;  %v695_v42 = vsel %vm685_vm13, %v681_v57, 1326507024  ;;  %v705_v4 = vmul.u32 %v698_v28, %v689_v40 }
  0x8e   : > { %v1724_v39 = vadd.s32 4294967294, %v379_v25  ;;  %v696_v13 = vsel %vm684_vm1, %v678_v17, %v695_v42  ;;  %v766_v6 = vsel %vm765_vm3, %v764_v44, 0  ;;  %v708_v63 = vadd.s32 1, %v2342_v54 }
  0x8f   : > { %v285_v31 = vshll.u32 %v284_v60, 23  ;;  %v282_v1 = vor.u32 %v281_v2, %v280_v58  ;;  %v697_v46 = vsel %vm683_vm0, %v694_v37, %v696_v13  ;;  %v754_v10 = vand.u32 2147483647, %v2283_v55 }
  0x90   : > { %vm1725_vm2 = vcmp.lt.s32.totalorder %v1724_v39, 0  ;;  %v2345_v48 = vmul.u32.u64.low %v698_v28, %v697_v46  ;;  %v2346_v50 = vmul.u32.u64.high %v698_v28, %v697_v46, %v2345_v48  ;;  %v2359_v60 = vrot.slane %v2303_v24, %v2162_v14 }
  0x91   : > { %v286_v43 = vor.u32 4788187, %v285_v31  ;;  %v382_v47 = vsel %vm1725_vm2, 0, %v1724_v39  ;;  %v289_v62 = vcvt.s32.f32 %v282_v1  ;;  %v1087_v28 = vfloor.f32 %v2350_v45 }
  0x92   : > { %v383_v52 = vsub.s32 32, %v382_v47  ;;  %v384_v53 = vshll.u32 %v375_v49, %v382_v47  ;;  %v387_v56 = vsub.s32 4294967266, %v382_v47  ;;  %vm707_vm4 = vc.u32 %v2346_v50, %v2341_v51 }
  0x93   : > { %v287_v26 = vand.u32 2147483647, %v286_v43  ;;  %v768_v49 = vand.u32 31, %v766_v6  ;;  %v709_v57 = vsel %vm707_vm4, %v708_v63, %v2342_v54  ;;  %v767_v0 = vshrl.u32 %v766_v6, 5 }
  0x94   : > { %v385_v17 = vshrl.u32 %v367_v12, %v383_v52  ;;  %v388_v8 = vadd.s32 127, %v387_v56  ;;  %v710_v59 = vadd.s32 %v709_v57, %v705_v4  ;;  %v761_v12 = vand.u32 8388607, %v754_v10 }
  0x95   : > { %v769_v2 = vsub.s32 32, %v768_v49  ;;  %v290_v20 = vmul.f32 %v289_v62, %v287_v26  ;;  %v771_v37 = vshll.u32 %v2019_v5, %v768_v49  ;;  %v774_v41 = vshll.u32 %v2020_v7, %v768_v49 }
  0x96   : > { %v386_v58 = vor.u32 %v385_v17, %v384_v53  ;;  %v389_v16 = vshll.u32 %v388_v8, 23  ;;  %v711_v31 = vadd.s32 536870912, %v710_v59  ;;  %v777_v42 = vshll.u32 %v2021_v9, %v768_v49 }
  0x97   : > { %v772_v40 = vshrl.u32 %v2020_v7, %v769_v2  ;;  %v775_v14 = vshrl.u32 %v2021_v9, %v769_v2  ;;  %v778_v1 = vshrl.u32 %v2022_v11, %v769_v2  ;;  %v780_v43 = vshll.u32 %v2022_v11, %v768_v49 }
  0x98   : > { %v390_v23 = vor.u32 4788187, %v389_v16  ;;  %v393_v25 = vcvt.s32.f32 %v386_v58  ;;  %v2368_v24 = vshrl.u32 %v711_v31, 30  ;;  %v291_v13 = vxor.u32 2147483648, %v290_v20 }
  0x99   : > { %v781_v46 = vshrl.u32 %v2023_v15, %v769_v2  ;;  %v783_v54 = vshll.u32 %v2023_v15, %v768_v49  ;;  %vm2377_vm5 = vcmp.le.f32.partialorder %v207_v36, 0.7853982  ;;  %vm209_vm6 = vcmp.lt.s32.totalorder %v2181_v32, 0 }
  0x9a   : > { %v391_v39 = vand.u32 2147483647, %v390_v23  ;;  %v713_v48 = vshll.u32 %v2368_v24, 30  ;;  %v784_v52 = vshrl.u32 %v2024_v27, %v769_v2  ;;  %v762_v53 = vor.u32 8388608, %v761_v12 }
  0x9b   : > { %v773_v56 = vor.u32 %v772_v40, %v771_v37  ;;  %v776_v62 = vor.u32 %v775_v14, %v774_v41  ;;  %v782_v4 = vor.u32 %v781_v46, %v780_v43  ;;  %v779_v26 = vor.u32 %v778_v1, %v777_v42 }
  0x9c   : > { %v394_v44 = vmul.f32 %v393_v25, %v391_v39  ;;  %v2384_v6 = vsub.s32 %v710_v59, %v713_v48  ;;  %vm786_vm7 = vcmp.lt.s32.totalorder %v767_v0, 1  ;;  %vm789_vm8 = vcmp.lt.s32.totalorder %v767_v0, 4 }
  0x9d   : > { %v292_v36 = vsel %vm209_vm6, %v291_v13, %v290_v20  ;;  %v785_v8 = vor.u32 %v784_v52, %v783_v54  ;;  %vm788_vm9 = vcmp.lt.s32.totalorder %v767_v0, 3  ;;  %vm313_vm10 = vcmp.lt.s32.totalorder %v2183_v33, 0 }
  0x9e   : > { %v395_v17 = vxor.u32 2147483648, %v394_v44  ;;  %v716_v63 = vsub.s32 0, %v2384_v6  ;;  %v770_v49 = vshrl.u32 %v2019_v5, %v769_v2  ;;  %vm787_vm11 = vcmp.lt.s32.totalorder %v767_v0, 2 }
  0x9f   : > { %v791_v58 = vsel %vm789_vm8, %v779_v26, 2102212464  ;;  %v794_v16 = vsel %vm786_vm7, %v773_v56, %v776_v62  ;;  %v795_v57 = vsel %vm789_vm8, %v782_v4, 920167782  ;;  %v802_v59 = vshll.u32 %v762_v53, 8 }
  0xa0   : > { %v295_v20 = vsel %vm2377_vm5, %v2181_v32, %v292_v36  ;;  %vm2399_vm12 = vcmp.le.f32.partialorder %v311_v38, 0.7853982  ;;  %v1738_v2 = vmin.u32 %v716_v63, %v2384_v6  ;;  %v796_v25 = vsel %vm788_vm9, %v779_v26, %v795_v57 }
  0xa1   : > { %v396_v31 = vsel %vm313_vm10, %v395_v17, %v394_v44  ;;  %v797_v12 = vsel %vm787_vm11, %v794_v16, %v796_v25  ;;  %v798_v37 = vsel %vm786_vm7, %v776_v62, %v779_v26  ;;  %v799_v39 = vsel %vm789_vm8, %v785_v8, 1326507024 }
  0xa2   : > { %v293_v40 = vsub.s32 4, %v2288_v3  ;;  %v718_v41 = vclz %v1738_v2  ;;  %v790_v38 = vsel %vm786_vm7, %v770_v49, %v773_v56  ;;  %v792_v14 = vsel %vm788_vm9, %v776_v62, %v791_v58 }
  0xa3   : > { %1884 = vcosq.f32 %v295_v20  ;;  %v800_v42 = vsel %vm788_vm9, %v782_v4, %v799_v39  ;;  %v2414_v1 = vmul.u32.u64.low %v802_v59, %v797_v12  ;;  %v2415_v43 = vmul.u32.u64.high %v802_v59, %v797_v12, %v2414_v1 }
  0xa4   : > { %v399_v13 = vsel %vm2399_vm12, %v2183_v33, %v396_v31  ;;  %v1739_v44 = vadd.s32 4294967294, %v718_v41  ;;  %v801_v46 = vsel %vm787_vm11, %v798_v37, %v800_v42  ;;  %v1089_v54 = vsub.f32 %v2350_v45, %v1087_v28 }
  0xa5   : > { %v793_v48 = vsel %vm787_vm11, %v790_v38, %v792_v14  ;;  %v2424_v52 = vmul.u32.u64.low %v802_v59, %v801_v46  ;;  %v2425_v53 = vmul.u32.u64.high %v802_v59, %v801_v46, %v2424_v52  ;;  %v1086_v56 = vmul.f32 %v2173_v22, %v2359_v60 }
  0xa6   : > { %v294_v62 = vsel %vm209_vm6, %v293_v40, %v2288_v3  ;;  %1886 = vsinq.f32 %v295_v20  ;;  %v706_v4 = vadd.s32 %v2341_v51, %v2346_v50  ;;  %vm1740_vm13 = vcmp.lt.s32.totalorder %v1739_v44, 0 }
  0xa7   : > { %v397_v26 = vsub.s32 4, %v2308_v30  ;;  %1888 = vcosq.f32 %v399_v13  ;;  %v721_v45 = vsel %vm1740_vm13, 0, %v1739_v44  ;;  %v812_v28 = vadd.s32 1, %v2415_v43 }
  0xa8   : > { %v722_v0 = vsub.s32 32, %v721_v45  ;;  %v723_v36 = vshll.u32 %v2384_v6, %v721_v45  ;;  %v809_v17 = vmul.u32 %v802_v59, %v793_v48  ;;  %v2437_v22 = vmul.f32 6.2831855, %v1089_v54 }
  0xa9   : > { %v296_v3 = vsel %vm2377_vm5, 0, %v294_v62  ;;  %1890 = vsinq.f32 %v399_v13  ;;  %v726_v8 = vsub.s32 4294967266, %v721_v45  ;;  %vm811_vm14 = vc.u32 %v2425_v53, %v2414_v1 }
  0xaa   : > { %v724_v63 = vshrl.u32 %v706_v4, %v722_v0  ;;  %v1088_v51 = vfloor.f32 %v1086_v56  ;;  %v398_v50 = vsel %vm313_vm10, %v397_v26, %v2308_v30  ;;  %v813_v6 = vsel %vm811_vm14, %v812_v28, %v2415_v43 }
  0xab   : > { %v727_v49 = vadd.s32 127, %v726_v8  ;;  %v300_v58 = vadd.s32 3, %v296_v3  ;;  %v814_v57 = vadd.s32 %v813_v6, %v809_v17  ;;  %v1096_v47 = vand.u32 2139095040, %v2437_v22 }
  0xac   : > { %v725_v16 = vor.u32 %v724_v63, %v723_v36  ;;  %v1093_v20 = vand.u32 2147483647, %v2437_v22  ;;  %v400_v2 = vsel %vm2399_vm12, 0, %v398_v50  ;;  %v1090_v31 = vsub.f32 %v1086_v56, %v1088_v51 }
  0xad   : > { %v728_v59 = vshll.u32 %v727_v49, 23  ;;  %v815_v25 = vadd.s32 536870912, %v814_v57  ;;  %v1097_v12 = vshrl.u32 %v1096_v47, 23  ;;  %v736_v30 = vsub.s32 4, %v2368_v24 }
  0xae   : > { %v732_v39 = vcvt.s32.f32 %v725_v16  ;;  %v2454_v41 = vand.u32 3, %v300_v58  ;;  %v2456_v38 = vand.u32 3, %v296_v3  ;;  %v404_v43 = vadd.s32 3, %v400_v2 }
  0xaf   : > { %v729_v37 = vor.u32 4788187, %v728_v59  ;;  %v2458_v14 = vshrl.u32 %v815_v25, 30  ;;  %v1756_v42 = vadd.s32 4294967169, %v1097_v12  ;;  %v1100_v23 = vand.u32 8388607, %v1093_v20 }
  0xb0   : > { %v2452_v40 = vpop.eup %1884  ;;  %vm2464_vm15 = vcmp.le.f32.partialorder %v650_v61, 0.7853982  ;;  %vm652_vm0 = vcmp.lt.s32.totalorder %v2188_v35, 0  ;;  %v2470_v54 = vmul.f32 6.2831855, %v1090_v31  ;;  %vm306_vm1 = vcmp.eq.s32.totalorder %v2454_v41, 2 }
  0xb1   : > { %v730_v13 = vand.u32 2147483647, %v729_v37  ;;  %v817_v46 = vshll.u32 %v2458_v14, 30  ;;  %v307_v52 = vxor.u32 2147483648, %v2452_v40  ;;  %v737_v62 = vsel %vm652_vm0, %v736_v30, %v2368_v24 }
  0xb2   : > { %v1103_v4 = vadd.s32 1, %v1756_v42  ;;  %vm513_vm2 = vcmp.eq.s32.totalorder %v2456_v38, 2  ;;  %v2482_v26 = vand.u32 3, %v400_v2  ;;  %v2486_v28 = vand.u32 3, %v404_v43 }
  0xb3   : > { %v2472_v48 = vpop.eup %1886  ;;  %v733_v56 = vmul.f32 %v732_v39, %v730_v13  ;;  %v2484_v45 = vsub.s32 %v814_v57, %v817_v46  ;;  %v1101_v36 = vor.u32 8388608, %v1100_v23  ;;  %v2492_v24 = vsel %vm2464_vm15, 0, %v737_v62 }
  0xb4   : > { %v2478_v61 = vpop.eup %1888  ;;  %vm1104_vm3 = vcmp.gt.s32.totalorder %v1103_v4, 0  ;;  %v1200_v63 = vand.u32 2139095040, %v2470_v54  ;;  %v304_v51 = vxor.u32 2147483648, %v2472_v48  ;;  %v2498_v50 = vsel %vm306_vm1, %v307_v52, %v2472_v48 }
  0xb5   : > { %v734_v0 = vxor.u32 2147483648, %v733_v56  ;;  %v820_v3 = vsub.s32 0, %v2484_v45  ;;  %v1105_v8 = vsel %vm1104_vm3, %v1103_v4, 0  ;;  %v2501_v49 = vand.u32 3, %v2492_v24 }
  0xb6   : > { %v2488_v17 = vpop.eup %1890  ;;  %v1107_v6 = vand.u32 31, %v1105_v8  ;;  %v2506_v58 = vsel %vm513_vm2, %v307_v52, %v2472_v48  ;;  %v810_v57 = vadd.s32 %v2414_v1, %v2425_v53  ;;  %v411_v2 = vxor.u32 2147483648, %v2478_v61 }
  0xb7   : > { %v735_v16 = vsel %vm652_vm0, %v734_v0, %v733_v56  ;;  %v1742_v47 = vmin.u32 %v820_v3, %v2484_v45  ;;  %v408_v59 = vxor.u32 2147483648, %v2488_v17  ;;  %v2515_v31 = vshll.u32 %v1101_v36, 8 }
  0xb8   : > { %v1108_v25 = vsub.s32 32, %v1107_v6  ;;  %v840_v37 = vsub.s32 4, %v2458_v14  ;;  %v2518_v39 = vshrl.u32 %v1105_v8, 5  ;;  %v1201_v30 = vshrl.u32 %v1200_v63, 23 }
  0xb9   : > { %v822_v12 = vclz %v1742_v47  ;;  %v738_v42 = vsel %vm2464_vm15, %v2188_v35, %v735_v16  ;;  %v1110_v53 = vshll.u32 %v2019_v5, %v1107_v6  ;;  %vm303_vm4 = vcmp.eq.s32.totalorder %v2454_v41, 0 }
  0xba   : > { %v1109_v1 = vshrl.u32 %v2019_v5, %v1108_v25  ;;  %v1111_v43 = vshrl.u32 %v2020_v7, %v1108_v25  ;;  %v1113_v23 = vshll.u32 %v2020_v7, %v1107_v6  ;;  %v1114_v46 = vshrl.u32 %v2021_v9, %v1108_v25 }
  0xbb   : > { %v1743_v13 = vadd.s32 4294967294, %v822_v12  ;;  %v1116_v52 = vshll.u32 %v2021_v9, %v1107_v6  ;;  %v1117_v62 = vshrl.u32 %v2022_v11, %v1108_v25  ;;  %v1119_v44 = vshll.u32 %v2022_v11, %v1107_v6 }
  0xbc   : > { %v1112_v56 = vor.u32 %v1111_v43, %v1110_v53  ;;  %v1120_v4 = vshrl.u32 %v2023_v15, %v1108_v25  ;;  %vm407_vm5 = vcmp.eq.s32.totalorder %v2486_v28, 0  ;;  %vm410_vm6 = vcmp.eq.s32.totalorder %v2486_v28, 2 }
  0xbd   : > { %vm510_vm7 = vcmp.eq.s32.totalorder %v2456_v38, 0  ;;  %vm1744_vm8 = vcmp.lt.s32.totalorder %v1743_v13, 0  ;;  %v1115_v0 = vor.u32 %v1114_v46, %v1113_v23  ;;  %v1122_v36 = vshll.u32 %v2023_v15, %v1107_v6 }
  0xbe   : > { %v1123_v3 = vshrl.u32 %v2024_v27, %v1108_v25  ;;  %v825_v8 = vsel %vm1744_vm8, 0, %v1743_v13  ;;  %v1118_v63 = vor.u32 %v1117_v62, %v1116_v52  ;;  %v1121_v16 = vor.u32 %v1120_v4, %v1119_v44 }
  0xbf   : > { %vm1125_vm9 = vcmp.lt.s32.totalorder %v2518_v39, 1  ;;  %vm302_vm10 = vcmp.lt.s32.totalorder %v2454_v41, 2  ;;  %v826_v47 = vsub.s32 32, %v825_v8  ;;  %v827_v12 = vshll.u32 %v2484_v45, %v825_v8 }
  0xc0   : > { %v830_v53 = vsub.s32 4294967266, %v825_v8  ;;  %v1124_v43 = vor.u32 %v1123_v3, %v1122_v36  ;;  %vm509_vm11 = vcmp.lt.s32.totalorder %v2456_v38, 2  ;;  %vm616_vm12 = vcmp.eq.s32.totalorder %v2482_v26, 2 }
  0xc1   : > { %1892 = vcosq.f32 %v738_v42  ;;  %vm756_vm13 = vcmp.lt.s32.totalorder %v2283_v55, 0  ;;  %vm1126_vm14 = vcmp.lt.s32.totalorder %v2518_v39, 2  ;;  %vm1127_vm15 = vcmp.lt.s32.totalorder %v2518_v39, 3 }
  0xc2   : > { %vm1128_vm0 = vcmp.lt.s32.totalorder %v2518_v39, 4  ;;  %vm406_vm1 = vcmp.lt.s32.totalorder %v2486_v28, 2  ;;  %vm613_vm2 = vcmp.eq.s32.totalorder %v2482_v26, 0  ;;  %v828_v45 = vshrl.u32 %v810_v57, %v826_v47 }
  0xc3   : > { %v831_v6 = vadd.s32 127, %v830_v53  ;;  %v1130_v25 = vsel %vm1128_vm0, %v1118_v63, 2102212464  ;;  %v1133_v13 = vsel %vm1125_vm9, %v1112_v56, %v1115_v0  ;;  %1894 = vsinq.f32 %v738_v42 }
  0xc4   : > { %v1134_v23 = vsel %vm1128_vm0, %v1121_v16, 920167782  ;;  %v1137_v46 = vsel %vm1125_vm9, %v1115_v0, %v1118_v63  ;;  %v1138_v52 = vsel %vm1128_vm0, %v1124_v43, 1326507024  ;;  %v829_v62 = vor.u32 %v828_v45, %v827_v12 }
  0xc5   : > { %v832_v44 = vshll.u32 %v831_v6, 23  ;;  %v1129_v4 = vsel %vm1125_vm9, %v1109_v1, %v1112_v56  ;;  %v1135_v36 = vsel %vm1127_vm15, %v1118_v63, %v1134_v23  ;;  %v1131_v57 = vsel %vm1127_vm15, %v1115_v0, %v1130_v25 }
  0xc6   : > { %v1136_v3 = vsel %vm1126_vm14, %v1133_v13, %v1135_v36  ;;  %v1139_v42 = vsel %vm1127_vm15, %v1121_v16, %v1138_v52  ;;  %v1760_v8 = vadd.s32 4294967169, %v1201_v30  ;;  %v836_v53 = vcvt.s32.f32 %v829_v62 }
  0xc7   : > { %v833_v47 = vor.u32 4788187, %v832_v44  ;;  %v1140_v12 = vsel %vm1126_vm14, %v1137_v46, %v1139_v42  ;;  %v1197_v1 = vand.u32 2147483647, %v2470_v54  ;;  %v305_v56 = vsel %vm303_vm4, %v2452_v40, %v304_v51 }
  0xc8   : > { %v2572_v0 = vmul.u32.u64.low %v2515_v31, %v1140_v12  ;;  %v2573_v63 = vmul.u32.u64.high %v2515_v31, %v1140_v12, %v2572_v0  ;;  %v1207_v43 = vadd.s32 1, %v1760_v8  ;;  %v1132_v30 = vsel %vm1126_vm14, %v1129_v4, %v1131_v57 }
  0xc9   : > { %v834_v16 = vand.u32 2147483647, %v833_v47  ;;  %v2578_v45 = vmul.u32.u64.low %v2515_v31, %v1136_v3  ;;  %v2579_v6 = vmul.u32.u64.high %v2515_v31, %v1136_v3, %v2578_v45  ;;  %v409_v25 = vsel %vm407_vm5, %v2478_v61, %v408_v59 }
  0xca   : > { %v412_v13 = vsel %vm410_vm6, %v411_v2, %v2488_v17  ;;  %v512_v39 = vsel %vm510_vm7, %v2452_v40, %v304_v51  ;;  %vm1208_vm3 = vcmp.gt.s32.totalorder %v1207_v43, 0  ;;  %v841_v46 = vsel %vm756_vm13, %v840_v37, %v2458_v14 }
  0xcb   : > { %v837_v23 = vmul.f32 %v836_v53, %v834_v16  ;;  %v1204_v52 = vand.u32 8388607, %v1197_v1  ;;  %v1209_v62 = vsel %vm1208_vm3, %v1207_v43, 0  ;;  %v2607_v48 = vsel %vm302_vm10, %v305_v56, %v2498_v50 }
  0xcc   : > { %vm2611_vm4 = vcmp.le.f32.partialorder %v754_v10, 0.7853982  ;;  %v1148_v51 = vmul.u32 %v2515_v31, %v1132_v30  ;;  %vm1150_vm5 = vc.u32 %v2573_v63, %v2578_v45  ;;  %v2621_v14 = vsel %vm509_vm11, %v512_v39, %v2506_v58 }
  0xcd   : > { %v2628_v41 = vsel %vm616_vm12, %v411_v2, %v2488_v17  ;;  %v838_v10 = vxor.u32 2147483648, %v837_v23  ;;  %v1151_v50 = vadd.s32 1, %v2579_v6  ;;  %v2633_v31 = vsel %vm406_vm1, %v409_v25, %v412_v13 }
  0xce   : > { %v2640_v38 = vsel %vm613_vm2, %v2478_v61, %v408_v59  ;;  %v2644_v58 = vsel %vm2611_vm4, 0, %v841_v46  ;;  %v1211_v2 = vand.u32 31, %v1209_v62  ;;  %v2646_v37 = vpop.eup %1892  ;;  %vm956_vm6 = vcmp.eq.s32.totalorder %v2501_v49, 2 }
  0xcf   : > { %v839_v44 = vsel %vm756_vm13, %v838_v10, %v837_v23  ;;  %v1152_v28 = vsel %vm1150_vm5, %v1151_v50, %v2579_v6  ;;  %v1205_v17 = vor.u32 8388608, %v1204_v52  ;;  %v1210_v4 = vshrl.u32 %v1209_v62, 5 }
  0xd0   : > { %v842_v61 = vsel %vm2611_vm4, %v2283_v55, %v839_v44  ;;  %vm953_vm7 = vcmp.eq.s32.totalorder %v2501_v49, 0  ;;  %v1153_v59 = vadd.s32 %v1152_v28, %v1148_v51  ;;  %v1212_v36 = vsub.s32 32, %v1211_v2  ;;  %v2657_v3 = vpop.eup %1894 }
  0xd1   : > { %v1214_v57 = vshll.u32 %v2019_v5, %v1211_v2  ;;  %vm299_vm8 = vweird.f32 %v2181_v32  ;;  %1896 = vcosq.f32 %v842_v61  ;;  %v1217_v42 = vshll.u32 %v2020_v7, %v1211_v2 }
  0xd2   : > { %v1220_v8 = vshll.u32 %v2021_v9, %v1211_v2  ;;  %v1223_v47 = vshll.u32 %v2022_v11, %v1211_v2  ;;  %vm612_vm9 = vcmp.lt.s32.totalorder %v2482_v26, 2  ;;  %1898 = vsinq.f32 %v842_v61 }
  0xd3   : > { %v1154_v53 = vadd.s32 536870912, %v1153_v59  ;;  %v1213_v12 = vshrl.u32 %v2019_v5, %v1212_v36  ;;  %v1215_v56 = vshrl.u32 %v2020_v7, %v1212_v36  ;;  %vm403_vm10 = vweird.f32 %v2183_v33 }
  0xd4   : > { %vm952_vm11 = vcmp.lt.s32.totalorder %v2501_v49, 2  ;;  %v1218_v0 = vshrl.u32 %v2021_v9, %v1212_v36  ;;  %v1221_v43 = vshrl.u32 %v2022_v11, %v1212_v36  ;;  %v1224_v16 = vshrl.u32 %v2023_v15, %v1212_v36 }
  0xd5   : > { %v1226_v30 = vshll.u32 %v2023_v15, %v1211_v2  ;;  %v2672_v6 = vshrl.u32 %v1154_v53, 30  ;;  %v1216_v25 = vor.u32 %v1215_v56, %v1214_v57  ;;  %v1227_v13 = vshrl.u32 %v2024_v27, %v1212_v36 }
  0xd6   : > { %vm1229_vm12 = vcmp.lt.s32.totalorder %v1210_v4, 1  ;;  %v750_v5 = vxor.u32 2147483648, %v2646_v37  ;;  %v1219_v7 = vor.u32 %v1218_v0, %v1217_v42  ;;  %v1222_v39 = vor.u32 %v1221_v43, %v1220_v8 }
  0xd7   : > { %v1225_v23 = vor.u32 %v1224_v16, %v1223_v47  ;;  %vm742_vm13 = vweird.f32 %v2188_v35  ;;  %v747_v9 = vxor.u32 2147483648, %v2657_v3  ;;  %v1156_v11 = vshll.u32 %v2672_v6, 30 }
  0xd8   : > { %v1228_v46 = vor.u32 %v1227_v13, %v1226_v30  ;;  %vm1231_vm14 = vcmp.lt.s32.totalorder %v1210_v4, 3  ;;  %vm1230_vm15 = vcmp.lt.s32.totalorder %v1210_v4, 2  ;;  %vm1232_vm0 = vcmp.lt.s32.totalorder %v1210_v4, 4 }
  0xd9   : > { %v1237_v15 = vsel %vm1229_vm12, %v1216_v25, %v1219_v7  ;;  %v1245_v52 = vshll.u32 %v1205_v17, 8  ;;  %v2680_v27 = vsub.s32 %v1153_v59, %v1156_v11  ;;  %v1233_v62 = vsel %vm1229_vm12, %v1213_v12, %v1216_v25 }
  0xda   : > { %v1234_v40 = vsel %vm1232_vm0, %v1222_v39, 2102212464  ;;  %v1238_v51 = vsel %vm1232_vm0, %v1225_v23, 920167782  ;;  %v1241_v2 = vsel %vm1229_vm12, %v1219_v7, %v1222_v39  ;;  %v1242_v44 = vsel %vm1232_vm0, %v1228_v46, 1326507024 }
  0xdb   : > { %v1235_v10 = vsel %vm1231_vm14, %v1219_v7, %v1234_v40  ;;  %v1239_v50 = vsel %vm1231_vm14, %v1222_v39, %v1238_v51  ;;  %vm846_vm1 = vweird.f32 %v2283_v55  ;;  %v958_v28 = vsel %vm956_vm6, %v750_v5, %v2657_v3 }
  0xdc   : > { %v1054_v17 = vand.u32 3, %v2644_v58  ;;  %v1159_v61 = vsub.s32 0, %v2680_v27  ;;  %v1240_v59 = vsel %vm1230_vm15, %v1237_v15, %v1239_v50  ;;  %v955_v36 = vsel %vm953_vm7, %v2646_v37, %v747_v9 }
  0xdd   : > { %v1243_v57 = vsel %vm1231_vm14, %v1225_v23, %v1242_v44  ;;  %v2701_v42 = vmul.u32.u64.low %v1245_v52, %v1240_v59  ;;  %v2702_v8 = vmul.u32.u64.high %v1245_v52, %v1240_v59, %v2701_v42  ;;  %v2708_v47 = vsel %vm299_vm8, nan, %v2607_v48 }
  0xde   : > { %v1757_v53 = vmin.u32 %v1159_v61, %v2680_v27  ;;  %v1236_v12 = vsel %vm1230_vm15, %v1233_v62, %v1235_v10  ;;  %v1244_v56 = vsel %vm1230_vm15, %v1241_v2, %v1243_v57  ;;  %v2716_v0 = vsel %vm299_vm8, nan, %v2621_v14  ;;  %v2725_v48 = vpop.eup %1896 }
  0xdf   : > { %v619_v43 = vsel %vm612_vm9, %v2640_v38, %v2628_v41  ;;  %v2722_v16 = vmul.u32.u64.low %v1245_v52, %v1244_v56  ;;  %v2723_v30 = vmul.u32.u64.high %v1245_v52, %v1244_v56, %v2722_v16  ;;  %v2730_v4 = vsel %vm403_vm10, nan, %v2633_v31  ;;  %v2734_v25 = vpop.eup %1898 }
  0xe0   : > { %v959_v32 = vsel %vm952_vm11, %v955_v36, %v958_v28  ;;  %vm1059_vm2 = vcmp.eq.s32.totalorder %v1054_v17, 2  ;;  %v1161_v14 = vclz %v1757_v53  ;;  %v854_v26 = vxor.u32 2147483648, %v2725_v48 }
  0xe1   : > { %vm1056_vm3 = vcmp.eq.s32.totalorder %v1054_v17, 0  ;;  %v1252_v41 = vmul.u32 %v1245_v52, %v1236_v12  ;;  %v1255_v38 = vadd.s32 1, %v2702_v8  ;;  %v2740_v13 = vsel %vm403_vm10, nan, %v619_v43 }
  0xe2   : > { %v851_v31 = vxor.u32 2147483648, %v2734_v25  ;;  %vm1055_vm4 = vcmp.lt.s32.totalorder %v1054_v17, 2  ;;  %v1758_v7 = vadd.s32 4294967294, %v1161_v14  ;;  %v2745_v49 = vsel %vm742_vm13, nan, %v959_v32 }
  0xe3   : > { %v1061_v39 = vsel %vm1059_vm2, %v854_v26, %v2734_v25  ;;  %v1149_v23 = vadd.s32 %v2578_v45, %v2573_v63  ;;  %vm1254_vm5 = vc.u32 %v2723_v30, %v2701_v42  ;;  %v1509_v46 = vrot.slane %v2708_v47, 5 }
  0xe4   : > { %v1058_v33 = vsel %vm1056_vm3, %v2725_v48, %v851_v31  ;;  %vm1759_vm6 = vcmp.lt.s32.totalorder %v1758_v7, 0  ;;  %v1256_v11 = vsel %vm1254_vm5, %v1255_v38, %v2702_v8  ;;  %v1510_v40 = vrot.slane %v2730_v4, 5 }
  0xe5   : > { %v1062_v15 = vsel %vm1055_vm4, %v1058_v33, %v1061_v39  ;;  %v1164_v52 = vsel %vm1759_vm6, 0, %v1758_v7  ;;  %v1257_v62 = vadd.s32 %v1256_v11, %v1252_v41  ;;  %v1527_v45 = vrot.slane %v2716_v0, 3 }
  0xe6   : > { %v1165_v51 = vsub.s32 32, %v1164_v52  ;;  %v1166_v63 = vshll.u32 %v2680_v27, %v1164_v52  ;;  %v1528_v10 = vrot.slane %v2740_v13, 3  ;;  %v2765_v50 = vsel %vm846_vm1, nan, %v1062_v15 }
  0xe7   : > { %v1169_v2 = vsub.s32 4294967266, %v1164_v52  ;;  %v1258_v44 = vadd.s32 536870912, %v1257_v62  ;;  %v1533_v28 = vrot.slane %v2745_v49, 5  ;;  %vm1543_vm7 = vcmask 1040384  }
  0xe8   : > { %v1167_v17 = vshrl.u32 %v1149_v23, %v1165_v51  ;;  %vm1546_vm8 = vcmask 1041408   ;;  %vm1549_vm9 = vcmask 1042432   ;;  %v1544_v27 = vsel %vm1543_vm7, %v2165_v18, %v2171_v21 }
  0xe9   : > { %v1170_v61 = vadd.s32 127, %v1169_v2  ;;  %v2769_v59 = vshrl.u32 %v1258_v44, 30  ;;  %v1545_v36 = vsel %vm1543_vm7, %v2168_v19, %v2186_v34  ;;  %v1534_v8 = vrot.slane %v2765_v50, 5 }
  0xea   : > { %v1168_v57 = vor.u32 %v1167_v17, %v1166_v63  ;;  %v1547_v53 = vsel %vm1546_vm8, %v1544_v27, %v2330_v29  ;;  %v1548_v12 = vsel %vm1546_vm8, %v1545_v36, %v2359_v60  ;;  %v1560_v29 = vsel %vm1549_vm9, %v1527_v45, %v1533_v28 }
  0xeb   : > { %v1171_v56 = vshll.u32 %v1170_v61, 23  ;;  %v1260_v43 = vshll.u32 %v2769_v59, 30  ;;  %v1550_v16 = vsel %vm1549_vm9, %v1547_v53, %v1509_v46  ;;  %v1551_v18 = vsel %vm1549_vm9, %v1548_v12, %v1510_v40 }
  0xec   : > { %v1175_v19 = vcvt.s32.f32 %v1168_v57  ;;  %v1561_v60 = vsel %vm1549_vm9, %v1528_v10, %v1534_v8  ;;  %v1783_v32 = vpack.c.bf16 %v1551_v18, %v1550_v16  ;;  %v2025_v23 = vmov 0.0|0.0  }
  0xed   : > { %v1172_v21 = vor.u32 4788187, %v1171_v56  ;;  %v1261_v34 = vsub.s32 %v1257_v62, %v1260_v43  ;;  %v1786_v38 = vpack.c.bf16 %v1561_v60, %v1560_v29  ;;  %1607 = vst [vmem:[%s2797_s19 + $0x28] sm:$0xff] %v2025_v23  ;;  %vm1095_vm10 = vcmp.lt.s32.totalorder %v2437_v22, 0 }
  0xee   : > { %1602 = vst [vmem:[%s2797_s19] sm:$0xff] %v1783_v32  ;;  %vm2805_vm11 = vcmp.le.f32.partialorder %v1093_v20, 0.7853982  ;;  %v1253_v63 = vadd.s32 %v2701_v42, %v2723_v30  ;;  %v1179_v61 = vsub.s32 4, %v2672_v6  ;;  %v743_v42 = vadd.s32 3, %v2492_v24 }
  0xef   : > { %v1173_v14 = vand.u32 2147483647, %v1172_v21  ;;  %v1263_v41 = vsub.s32 0, %v1261_v34  ;;  %1605 = vst [vmem:[%s2797_s19 + $0x18] sm:$0xff] %v1786_v38  ;;  %v847_v21 = vadd.s32 3, %v2644_v58  ;;  %vm1199_vm14 = vcmp.lt.s32.totalorder %v2470_v54, 0 }
  0xf0   : > { %v1180_v12 = vsel %vm1095_vm10, %v1179_v61, %v2672_v6  ;;  %vm2828_vm15 = vcmp.le.f32.partialorder %v1197_v1, 0.7853982 }
  0xf1   : > { %v1176_v7 = vmul.f32 %v1175_v19, %v1173_v14  ;;  %v1761_v39 = vmin.u32 %v1263_v41, %v1261_v34  ;;  %v1182_v16 = vsel %vm2805_vm11, 0, %v1180_v12  ;;  %v1283_v19 = vsub.s32 4, %v2769_v59 }
  0xf2   : > { %v1186_v29 = vadd.s32 3, %v1182_v16  ;;  %v1394_v41 = vand.u32 3, %v1182_v16  ;;  %v848_v38 = vand.u32 3, %v847_v21 }
  0xf3   : > { %v1177_v11 = vxor.u32 2147483648, %v1176_v7  ;;  %v1265_v15 = vclz %v1761_v39  ;;  %v1284_v58 = vsel %vm1199_vm14, %v1283_v19, %v2769_v59 }
  0xf4   : > { %v1187_v39 = vand.u32 3, %v1186_v29  ;;  %v1286_v33 = vsel %vm2828_vm15, 0, %v1284_v58  ;;  %vm1396_vm4 = vcmp.eq.s32.totalorder %v1394_v41, 0  ;;  %vm1399_vm5 = vcmp.eq.s32.totalorder %v1394_v41, 2 }
  0xf5   : > { %v1178_v52 = vsel %vm1095_vm10, %v1177_v11, %v1176_v7  ;;  %v1762_v62 = vadd.s32 4294967294, %v1265_v15  ;;  %vm850_vm6 = vcmp.eq.s32.totalorder %v848_v38, 0  ;;  %vm853_vm8 = vcmp.eq.s32.totalorder %v848_v38, 2 }
  0xf6   : > { %v1181_v51 = vsel %vm2805_vm11, %v2437_v22, %v1178_v52  ;;  %vm1189_vm9 = vcmp.eq.s32.totalorder %v1187_v39, 0  ;;  %vm1192_vm10 = vcmp.eq.s32.totalorder %v1187_v39, 2  ;;  %v1290_v15 = vadd.s32 3, %v1286_v33 }
  0xf7   : > { %vm1763_vm12 = vcmp.lt.s32.totalorder %v1762_v62, 0  ;;  %1900 = vcosq.f32 %v1181_v51  ;;  %vm1395_vm11 = vcmp.lt.s32.totalorder %v1394_v41, 2 }
  0xf8   : > { %v1268_v2 = vsel %vm1763_vm12, 0, %v1762_v62  ;;  %1902 = vsinq.f32 %v1181_v51  ;;  %vm849_vm12 = vcmp.lt.s32.totalorder %v848_v38, 2 }
  0xf9   : > { %v1269_v20 = vsub.s32 32, %v1268_v2  ;;  %v1270_v44 = vshll.u32 %v1261_v34, %v1268_v2  ;;  %v1273_v17 = vsub.s32 4294967266, %v1268_v2  ;;  %v744_v34 = vand.u32 3, %v743_v42 }
  0xfb   : > { %v1271_v27 = vshrl.u32 %v1253_v63, %v1269_v20  ;;  %v1274_v36 = vadd.s32 127, %v1273_v17  ;;  %vm746_vm0 = vcmp.eq.s32.totalorder %v744_v34, 0  ;;  %vm749_vm2 = vcmp.eq.s32.totalorder %v744_v34, 2 }
  0xfc   : > { %vm745_vm3 = vcmp.lt.s32.totalorder %v744_v34, 2  ;;  %v748_v59 = vsel %vm746_vm0, %v2646_v37, %v747_v9  ;;  %v751_v11 = vsel %vm749_vm2, %v750_v5, %v2657_v3  ;;  %v852_v63 = vsel %vm850_vm6, %v2725_v48, %v851_v31 }
  0xfd   : > { %v1272_v57 = vor.u32 %v1271_v27, %v1270_v44  ;;  %v1275_v53 = vshll.u32 %v1274_v36, 23  ;;  %v752_v51 = vsel %vm745_vm3, %v748_v59, %v751_v11  ;;  %v855_v9 = vsel %vm853_vm8, %v854_v26, %v2734_v25 }
  0xfe   : > { %v753_v2 = vsel %vm742_vm13, nan, %v752_v51  ;;  %v856_v20 = vsel %vm849_vm12, %v852_v63, %v855_v9  ;;  %v1291_v44 = vand.u32 3, %v1290_v15  ;;  %v1497_v17 = vand.u32 3, %v1286_v33 }
  0xff   : > { %v1276_v56 = vor.u32 4788187, %v1275_v53  ;;  %v1279_v43 = vcvt.s32.f32 %v1272_v57  ;;  %v857_v31 = vsel %vm846_vm1, nan, %v856_v20  ;;  %v1515_v36 = vrot.slane %v753_v2, 7 }
 0x100   : > { %vm1289_vm0 = vweird.f32 %v2470_v54  ;;  %vm1296_vm2 = vcmp.eq.s32.totalorder %v1291_v44, 2  ;;  %vm1502_vm3 = vcmp.eq.s32.totalorder %v1497_v17, 2  ;;  %vm1292_vm13 = vcmp.lt.s32.totalorder %v1291_v44, 2 }
 0x101   : > { %v1277_v30 = vand.u32 2147483647, %v1276_v56  ;;  %vm1498_vm6 = vcmp.lt.s32.totalorder %v1497_v17, 2  ;;  %v1516_v53 = vrot.slane %v857_v31, 7  ;;  %vm1554_vm1 = vcmask 1046528  }
 0x102   : > { %vm1557_vm8 = vcmask 1044480  }
 0x103   : > { %v1280_v18 = vmul.f32 %v1279_v43, %v1277_v30  ;;  %v1552_v43 = vsel %vm1543_vm7, %v1509_v46, %v1515_v36  ;;  %v1553_v47 = vsel %vm1543_vm7, %v1510_v40, %v1516_v53 }
 0x104   : > { %v1901_v60 = vpop.eup %1900 }
 0x105   : > { %v1281_v24 = vxor.u32 2147483648, %v1280_v18  ;;  %v1903_v32 = vpop.eup %1902  ;;  %v1193_v23 = vxor.u32 2147483648, %v1901_v60 }
 0x106   : > { %v1190_v1 = vxor.u32 2147483648, %v1903_v32 }
 0x107   : > { %v1282_v14 = vsel %vm1199_vm14, %v1281_v24, %v1280_v18  ;;  %v1401_v62 = vsel %vm1399_vm5, %v1193_v23, %v1903_v32  ;;  %vm1188_vm14 = vcmp.lt.s32.totalorder %v1187_v39, 2  ;;  %v1194_v3 = vsel %vm1192_vm10, %v1193_v23, %v1903_v32 }
 0x108   : > { %v1285_v7 = vsel %vm2828_vm15, %v2470_v54, %v1282_v14  ;;  %v1398_v52 = vsel %vm1396_vm4, %v1901_v60, %v1190_v1  ;;  %v1191_v37 = vsel %vm1189_vm9, %v1901_v60, %v1190_v1  ;;  %vm1185_vm15 = vweird.f32 %v2437_v22 }
 0x109   : > { %1904 = vcosq.f32 %v1285_v7  ;;  %v1402_v5 = vsel %vm1395_vm11, %v1398_v52, %v1401_v62  ;;  %v1195_v61 = vsel %vm1188_vm14, %v1191_v37, %v1194_v3  ;;  %vm1293_vm4 = vcmp.eq.s32.totalorder %v1291_v44, 0 }
 0x10a   : > { %1906 = vsinq.f32 %v1285_v7  ;;  %v1403_v27 = vsel %vm1185_vm15, nan, %v1402_v5  ;;  %v1196_v25 = vsel %vm1185_vm15, nan, %v1195_v61  ;;  %vm1499_vm5 = vcmp.eq.s32.totalorder %v1497_v17, 0 }
 0x10b   : > { %v1539_v35 = vrot.slane %v1403_v27, 7  ;;  %v1521_v56 = vrot.slane %v1196_v25, 1 }
 0x10d   : > { %v1562_v21 = vsel %vm1543_vm7, %v1533_v28, %v1539_v35  ;;  %v1555_v49 = vsel %vm1554_vm1, %v1552_v43, %v1521_v56  ;;  %v1558_v28 = vsel %vm1557_vm8, %v1521_v56, %v1527_v45 }
 0x10e   : > { %v1564_v54 = vsel %vm1554_vm1, %v1562_v21, 0.0 }
 0x116   : > { %v1905_v48 = vpop.eup %1904 }
 0x117   : > { %v1907_v22 = vpop.eup %1906  ;;  %v1297_v26 = vxor.u32 2147483648, %v1905_v48 }
 0x118   : > { %v1294_v57 = vxor.u32 2147483648, %v1907_v22 }
 0x119   : > { %v1298_v12 = vsel %vm1296_vm2, %v1297_v26, %v1907_v22  ;;  %v1504_v55 = vsel %vm1502_vm3, %v1297_v26, %v1907_v22 }
 0x11a   : > { %v1295_v42 = vsel %vm1293_vm4, %v1905_v48, %v1294_v57  ;;  %v1501_v30 = vsel %vm1499_vm5, %v1905_v48, %v1294_v57 }
 0x11b   : > { %v1299_v16 = vsel %vm1292_vm13, %v1295_v42, %v1298_v12  ;;  %v1505_v18 = vsel %vm1498_vm6, %v1501_v30, %v1504_v55 }
 0x11c   : > { %v1300_v19 = vsel %vm1289_vm0, nan, %v1299_v16  ;;  %v1506_v34 = vsel %vm1289_vm0, nan, %v1505_v18 }
 0x11d   : > { %v1522_v46 = vrot.slane %v1300_v19, 1  ;;  %v1540_v29 = vrot.slane %v1506_v34, 7 }
 0x11f   : > { %v1556_v4 = vsel %vm1554_vm1, %v1553_v47, %v1522_v46  ;;  %v1559_v40 = vsel %vm1557_vm8, %v1522_v46, %v1528_v10  ;;  %v1563_v6 = vsel %vm1543_vm7, %v1534_v8, %v1540_v29 }
 0x120   : > { %v1565_v0 = vsel %vm1554_vm1, %v1563_v6, 0.0  ;;  %v1784_v45 = vpack.c.bf16 %v1556_v4, %v1555_v49  ;;  %v1785_v24 = vpack.c.bf16 %v1559_v40, %v1558_v28 }
 0x121   : > { %v1787_v13 = vpack.c.bf16 %v1565_v0, %v1564_v54 }
 0x122   : > { %1603 = vst [vmem:[%s2797_s19 + $0x8] sm:$0xff] %v1784_v45  ;;  %1604 = vst [vmem:[%s2797_s19 + $0x10] sm:$0xff] %v1785_v24 }
 0x123   : > { %1606 = vst [vmem:[%s2797_s19 + $0x20] sm:$0xff] %v1787_v13 }
 0x124   : > { %1960 = shalt.err (!%p1957_p5)
}
 0x125   : > { %s1961_s6 = scalar_lea.hbm %s2884_s23, 768  ;;  %s1965_s5 = scalar_lea.hbm %s2935_s2, 1536 }
 0x126   : > { %p1962_p2 = scmp.ne.s32.totalorder %s2884_s23, %s1961_s6  ;;  %p1966_p9 = scmp.lt.s32.totalorder %s2884_s23, %s2935_s2 }
 0x127   : > { %p1967_p1 = scmp.lt.s32.totalorder %s1965_s5, %s1961_s6 }
 0x128   : > { %p1963_p12 = pnand %p1962_p2, %p2961_p8 }
 0x129   : > { %p1968_p4 = por %p1967_p1, %p1966_p9 }
 0x12a   : > { %p1964_p13 = pneg %p1963_p12 }
 0x12c   : > { %p1969_p6 = pnand %p1968_p4, %p1964_p13 }
 0x12e   : > { %1972 = shalt.err (!%p1969_p6)
}
 0x12f   : > { %s2027_s8 = smov 128   ;;  %s2028_s14 = smov 256  }
 0x130   : > { %s2029_s19 = smov 8  }
 0x131   : > { %1821 = dma.vmem_to_hbm [thread:$0]  (%p2961_p8), %s2887_s21, 768, %s2884_s23, %s1609_s26, %s2027_s8, %s2028_s14, %s2029_s19  }
 0x132 PF: > { %s1637_s20 = sand.u32 1, %s2003_s9   ;;  %p2962_p7 = scmp.ne.s32.totalorder %s2941_s16, 0 }
 0x133   : > { %p2963_p10 = scmp.ge.s32.totalorder %s2015_s12, 2  ;;  %s1638_s13 = scalar_lea.sflag [#allocation4], %s1637_s20 }
 0x135   : > { %p1832_p11 = pnand %p2963_p10, %p2962_p7 }
 0x137   : > { %p1833_p0 = pneg %p1832_p11 }
 0x139   : > { %1998 = dma.done.wait (%p1833_p0), %s1638_s13, 768  }
 0x13a   : > { %2000 = vsyncadd (%p1833_p0), %s1638_s13, 4294966528  ;;  %p16_p3 = scmp.ge.s32.totalorder %s2091_s18, 4   ;;  %s2964_s9 = smov %s2007_s10 }
 0x13b   : > { %s2965_s10 = smov %s2011_s11  ;;  %s2966_s11 = smov %s2108_s24 }
 0x13c   : > { %s2967_s12 = smov %s2091_s18  ;;  %18 = sbr.rel (!%p16_p3) target bundleno = 6 (0x6), region = 80 }
 0x141   :  { %1643 = vsyncpa [#allocation3], 1 }
 0x142   :  { %1645 = vsyncpa [#allocation3 + $0x1], 1 }
 0x143   :  { %1646 = vsyncpa [#allocation4], 1 }
 0x144   :  { %1648 = vsyncpa [#allocation4 + $0x1], 1 }
 0x145   :  { %1649 = vsyncpa [#allocation5], 1 }
 0x146   :  { %1651 = vsyncpa [#allocation5 + $0x1], 1 }

</bundles_post_ra>
